<compile_context>
chip_gen: v7x
topology: tpu7x:2x2x1
jax: 0.10.0
libtpu: 0.0.40
codegen_flags: <defaults>
</compile_context>

<pallas_src>
import functools

import jax
import jax.numpy as jnp
from jax.experimental import pallas as pl
from jax.experimental.pallas import tpu as pltpu


def _round_up(x, m):
    return ((x + m - 1) // m) * m


def _propagator_kernel(x_ref, w_ref, b_ref, o_ref):
    # x_ref: (TM, D), w_ref: (D, TN), b_ref: (1, TN), o_ref: (TM, TN)
    y = jnp.dot(x_ref[...], w_ref[...], preferred_element_type=jnp.float32)
    y = y + b_ref[...]
    o_ref[...] = jnp.maximum(y, 0.0).astype(o_ref.dtype)


def _propagator_kernel_res(x_ref, w_ref, b_ref, r_ref, o_ref):
    # x_ref: (TM, D), w_ref: (D, TN), b_ref: (1, TN), r_ref/o_ref: (TM, TN)
    y = jnp.dot(x_ref[...], w_ref[...], preferred_element_type=jnp.float32)
    y = y + b_ref[...] + r_ref[...].astype(jnp.float32)
    o_ref[...] = jnp.maximum(y, 0.0).astype(o_ref.dtype)


@functools.partial(
    jax.jit, static_argnames=("residual", "tm", "tn", "fast_path_elems"))
def propagator_forward(inputs, weight, bias, res=None, *, residual=False,
                       tm=512, tn=512, fast_path_elems=4096):
    """Propagator forward.

    inputs: (B, N, D) f32
    weight: (D, OUT) f32  (transpose of the PyTorch nn.Linear weight)
    bias:   (OUT,)   f32
    res:    (B, N, OUT) f32, required iff residual=True
    """
    B, N, D = inputs.shape
    OUT = weight.shape[1]
    M = B * N

    if residual and res is None:
        raise ValueError("residual=True requires `res`")

    x2 = inputs.reshape(M, D)
    r2 = res.reshape(M, OUT) if residual else None

    # Tiny problems: a pallas_call launch + pipeline prologue costs ~microseconds,
    # which dwarfs the actual work.  Let XLA fuse it.
    if M * OUT <= fast_path_elems:
        y = jnp.dot(x2, weight, preferred_element_type=jnp.float32) + bias
        if residual:
            y = y + r2
        return jnp.maximum(y, 0.0).astype(inputs.dtype).reshape(B, N, OUT)

    # --- tile selection ------------------------------------------------------
    # Row tile: a single full block when M fits, else `tm` (multiple of 8).
    # OUT tile: a single full block when OUT fits, else `tn` (multiple of 128).
    # Ragged edge blocks are handled by Pallas: OOB reads only ever feed
    # rows/columns whose writes are dropped, so no host-side padding is needed.
    tm_eff = M if M <= tm else tm
    tn_eff = OUT if OUT <= tn else tn
    if M > tm and tm % 8 != 0:
        raise ValueError("tm must be a multiple of 8 when M > tm")
    if OUT > tn and tn % 128 != 0:
        raise ValueError("tn must be a multiple of 128 when OUT > tn")

    grid = (pl.cdiv(OUT, tn_eff), pl.cdiv(M, tm_eff))  # (j: OUT tiles, i: M tiles)

    b2 = bias.reshape(1, OUT)

    # j is the OUTER grid axis; the weight/bias block index (0, j) is constant
    # across the inner i axis so those tiles stay resident (not re-DMA'd).
    x_spec = pl.BlockSpec((tm_eff, D), lambda j, i: (i, 0))
    w_spec = pl.BlockSpec((D, tn_eff), lambda j, i: (0, j))
    b_spec = pl.BlockSpec((1, tn_eff), lambda j, i: (0, j))
    r_spec = pl.BlockSpec((tm_eff, tn_eff), lambda j, i: (i, j))
    o_spec = pl.BlockSpec((tm_eff, tn_eff), lambda j, i: (i, j))

    # VMEM budget: double-buffered tiles + headroom, floored at the default
    # scoped limit and capped at 64 MiB (legal on v7x and on v5e/v6e).
    def tile_bytes(r, c, dt):
        return _round_up(r, 8) * _round_up(c, 128) * jnp.dtype(dt).itemsize

    vmem_bytes = 2 * (tile_bytes(tm_eff, D, inputs.dtype)
                      + tile_bytes(D, tn_eff, weight.dtype)
                      + tile_bytes(1, tn_eff, bias.dtype)
                      + tile_bytes(tm_eff, tn_eff, inputs.dtype))
    if residual:
        vmem_bytes += 2 * tile_bytes(tm_eff, tn_eff, res.dtype)
    vmem_bytes = int(min(max(vmem_bytes + (2 << 20), 32 << 20), 64 << 20))

    cparams = pltpu.CompilerParams(
        dimension_semantics=("parallel", "parallel"),
        vmem_limit_bytes=vmem_bytes)

    out_shape = jax.ShapeDtypeStruct((M, OUT), inputs.dtype)

    if residual:
        # NOTE: input_output_aliases={3: 0} could let the output reuse the
        # residual's HBM buffer, but the caller may still need `res` and
        # without donation XLA inserts a defensive copy anyway, so we skip it.
        y = pl.pallas_call(
            _propagator_kernel_res,
            out_shape=out_shape,
            grid=grid,
            in_specs=[x_spec, w_spec, b_spec, r_spec],
            out_specs=o_spec,
            compiler_params=cparams,
        )(x2, weight, b2, r2)
    else:
        y = pl.pallas_call(
            _propagator_kernel,
            out_shape=out_shape,
            grid=grid,
            in_specs=[x_spec, w_spec, b_spec],
            out_specs=o_spec,
            compiler_params=cparams,
        )(x2, weight, b2)

    return y.reshape(B, N, OUT)


def init_propagator_params(key, input_size, output_size):
    """Deterministic init mimicking nn.Linear (uniform +/- 1/sqrt(in))."""
    kw, kb = jax.random.split(key)
    bound = 1.0 / jnp.sqrt(jnp.float32(input_size))
    # Stored as (input_size, output_size) == PyTorch weight.T
    weight = jax.random.uniform(kw, (input_size, output_size), jnp.float32,
                                minval=-bound, maxval=bound)
    bias = jax.random.uniform(kb, (output_size,), jnp.float32,
                              minval=-bound, maxval=bound)
    return weight, bias


if __name__ == "__main__":
    key = jax.random.PRNGKey(0)
    k_in, k_res, k_par, k_in2, k_res2, k_par2 = jax.random.split(key, 6)

    # Shapes chosen so M = B*N is NOT a multiple of 8 and OUT is NOT a
    # multiple of 128 -> exercises ragged-block handling without host padding.
    B, N, D, OUT = 2, 67, 96, 160          # M = 134
    inputs = jax.random.normal(k_in, (B, N, D), jnp.float32)
    res = jax.random.normal(k_res, (B, N, OUT), jnp.float32)
    weight, bias = init_propagator_params(k_par, D, OUT)

    # 1) default tiles (single full block per axis: M <= tm, OUT <= tn)
    out_plain = propagator_forward(inputs, weight, bias, residual=False)
    out_res = propagator_forward(inputs, weight, bias, res, residual=True)
    # 2) forced tiled grid on both axes (ragged last blocks on M and OUT)
    out_tiled = propagator_forward(inputs, weight, bias, res, residual=True,
                                   tm=64, tn=128)
    # 3) tiny problem -> XLA fast path (no pallas launch)
    Bs, Ns, Ds, OUTs = 2, 4, 32, 32
    inp_s = jax.random.normal(k_in2, (Bs, Ns, Ds), jnp.float32)
    res_s = jax.random.normal(k_res2, (Bs, Ns, OUTs), jnp.float32)
    w_s, b_s = init_propagator_params(k_par2, Ds, OUTs)
    out_small = propagator_forward(inp_s, w_s, b_s, res_s, residual=True)

    jax.block_until_ready((out_plain, out_res, out_tiled, out_small))

    # Reference checks in plain JAX
    x2 = inputs.reshape(B * N, D)
    ref_plain = jnp.maximum(x2 @ weight + bias, 0.0).reshape(B, N, OUT)
    ref_res = jnp.maximum(x2 @ weight + bias + res.reshape(B * N, OUT),
                          0.0).reshape(B, N, OUT)
    xs2 = inp_s.reshape(Bs * Ns, Ds)
    ref_small = jnp.maximum(xs2 @ w_s + b_s + res_s.reshape(Bs * Ns, OUTs),
                            0.0).reshape(Bs, Ns, OUTs)

    assert out_plain.shape == (B, N, OUT) and out_res.shape == (B, N, OUT)
    assert jnp.allclose(out_plain, ref_plain, atol=1e-3, rtol=1e-3)
    assert jnp.allclose(out_res, ref_res, atol=1e-3, rtol=1e-3)
    assert jnp.allclose(out_tiled, ref_res, atol=1e-3, rtol=1e-3)
    assert jnp.allclose(out_small, ref_small, atol=1e-3, rtol=1e-3)

    print("KERNEL_OK")
</pallas_src>

<mosaic_0001>
module attributes {stable_mosaic.version = 11 : i64} {
  func.func @_propagator_kernel(%arg0: i32, %arg1: i32, %arg2: memref<134x96xf32, #tpu.memory_space<vmem>>, %arg3: memref<96x160xf32, #tpu.memory_space<vmem>>, %arg4: memref<1x160xf32, #tpu.memory_space<vmem>>, %arg5: memref<134x160xf32, #tpu.memory_space<vmem>>) attributes {dimension_semantics = [#tpu.dimension_semantics<parallel>, #tpu.dimension_semantics<parallel>], iteration_bounds = array<i64: 1, 1>, scalar_prefetch = 0 : i64, scratch_operands = 0 : i64, tpu.core_type = #tpu.core_type<tc>, window_params = [{transform_indices = @transform_0, window_bounds = array<i64: 134, 96>}, {transform_indices = @transform_1, window_bounds = array<i64: 96, 160>}, {transform_indices = @transform_2, window_bounds = array<i64: 1, 160>}, {transform_indices = @transform_3, window_bounds = array<i64: 134, 160>}]} {
    %c0 = arith.constant 0 : index
    %c0_0 = arith.constant 0 : index
    %0 = vector.load %arg2[%c0, %c0_0] : memref<134x96xf32, #tpu.memory_space<vmem>>, vector<134x96xf32>
    %c0_1 = arith.constant 0 : index
    %c0_2 = arith.constant 0 : index
    %1 = vector.load %arg3[%c0_1, %c0_2] : memref<96x160xf32, #tpu.memory_space<vmem>>, vector<96x160xf32>
    %cst = arith.constant dense<0.000000e+00> : vector<134x160xf32>
    %2 = tpu.matmul %0, %1, %cst {dimension_numbers = #tpu.dot_dimension_numbers<[1], [0], [0], [1], [0, 0, 1, 1], [], []>} : vector<134x96xf32>, vector<96x160xf32>, vector<134x160xf32> -> vector<134x160xf32>
    %c0_3 = arith.constant 0 : index
    %c0_4 = arith.constant 0 : index
    %3 = vector.load %arg4[%c0_3, %c0_4] : memref<1x160xf32, #tpu.memory_space<vmem>>, vector<1x160xf32>
    %4 = vector.broadcast %3 : vector<1x160xf32> to vector<134x160xf32>
    %5 = arith.addf %2, %4 : vector<134x160xf32>
    %cst_5 = arith.constant 0.000000e+00 : f32
    %6 = vector.broadcast %cst_5 : f32 to vector<134x160xf32>
    %7 = arith.maximumf %5, %6 : vector<134x160xf32>
    %c0_6 = arith.constant 0 : index
    %c0_7 = arith.constant 0 : index
    %8 = vector.load %arg5[%c0_6, %c0_7] : memref<134x160xf32, #tpu.memory_space<vmem>>, vector<134x160xf32>
    tpu.vector_store %arg5[%c0_6, %c0_7], %7 {strides = array<i32>} : memref<134x160xf32, #tpu.memory_space<vmem>>, vector<134x160xf32>,
    return
  }
  func.func @transform_0(%arg0: i32, %arg1: i32) -> (i32, i32) {
    %c0_i32 = arith.constant 0 : i32
    %c0_i32_0 = arith.constant 0 : i32
    return %arg1, %c0_i32 : i32, i32
  }
  func.func @transform_1(%arg0: i32, %arg1: i32) -> (i32, i32) {
    %c0_i32 = arith.constant 0 : i32
    %c0_i32_0 = arith.constant 0 : i32
    return %c0_i32, %arg0 : i32, i32
  }
  func.func @transform_2(%arg0: i32, %arg1: i32) -> (i32, i32) {
    %c0_i32 = arith.constant 0 : i32
    %c0_i32_0 = arith.constant 0 : i32
    return %c0_i32, %arg0 : i32, i32
  }
  func.func @transform_3(%arg0: i32, %arg1: i32) -> (i32, i32) {
    %c0_i32 = arith.constant 0 : i32
    return %arg1, %arg0 : i32, i32
  }
}

</mosaic_0001>

<bundles_post_ra>
// kernel: propagator_forward.1
= control target key start
LH: loop header
LB: loop body
LE: loop exit
PB: predicated region body
PF: predicated region fallthrough
CT: control target
= control target key end

     0   :  { %v414_v3 = vmov 0.0   ;;  %vm67_vm0 = vcmask 785408   ;;  %v57_v54 = vlaneseq  ;;  %vm321_vm1 = vcmask 261120   ;;  %s751_s1 = inlined_call_operand.vmem [shape: f32[96,160], index: 1, kind: input, shape index: {}]   ;;  %s752_s0 = inlined_call_operand.vmem [shape: f32[134,96], index: 0, kind: input, shape index: {}]   ;;  %s753_s2 = inlined_call_operand.vmem [shape: f32[1,160], index: 2, kind: input, shape index: {}]   ;;  %s754_s3 = inlined_call_operand.vmem [shape: f32[134,160], index: 3, kind: output, shape index: {}]  }
   0x1   :  { %v32_v0 = vld [vmem:[%s751_s1 + $0x8] sm:$0xff]  ;;  %v34_v1 = vld [vmem:[%s751_s1 + $0x18] sm:$0xff]  ;;  %v31_v2 = vld [vmem:[%s751_s1] sm:$0xff]  ;;  %183 = vmatprep.mubr.f32.mxu0 %v414_v3  ;;  %237 = vmatprep.mubr.f32.mxu1 %v414_v3  ;;  %vm354_vm2 = vcmask 259072  }
   0x2   :  { %v377_v4 = vpack.c.bf16 %v34_v1, %v32_v0  ;;  %v33_v5 = vld [vmem:[%s751_s1 + $0x10] sm:$0xff]  ;;  %v36_v6 = vld [vmem:[%s751_s1 + $0x28] sm:$0xff]  ;;  %v38_v7 = vld [vmem:[%s751_s1 + $0x38] sm:$0xff]  ;;  %v58_v55 = vshrl.u32 %v57_v54, 7 }
   0x3   :  { %v379_v8 = vpack.c.bf16 %v33_v5, %v31_v2  ;;  %v381_v9 = vpack.c.bf16 %v38_v7, %v36_v6  ;;  %v35_v10 = vld [vmem:[%s751_s1 + $0x20] sm:$0xff]  ;;  %v37_v11 = vld [vmem:[%s751_s1 + $0x30] sm:$0xff]  ;;  %v40_v12 = vld [vmem:[%s751_s1 + $0x48] sm:$0xff] }
   0x4   :  { %378 = vmatprep.subr.bf16.mxu0 %v377_v4  ;;  %401 = vmatprep.subr.bf16.mxu1 %v377_v4  ;;  %v42_v13 = vld [vmem:[%s751_s1 + $0x58] sm:$0xff]  ;;  %v383_v14 = vpack.c.bf16 %v37_v11, %v35_v10  ;;  %v39_v16 = vld [vmem:[%s751_s1 + $0x40] sm:$0xff]  ;;  %v41_v17 = vld [vmem:[%s751_s1 + $0x50] sm:$0xff]  ;;  %v59_v56 = vsub.s32 0, %v58_v55  ;;  %v63_v58 = vsub.s32 1, %v58_v55 }
   0x5   :  { %380 = vmatpush1.bf16.msra.mxu0 %v379_v8  ;;  %407 = vmatpush1.bf16.msra.mxu1 %v379_v8  ;;  %v385_v15 = vpack.c.bf16 %v42_v13, %v40_v12  ;;  %v44_v18 = vld [vmem:[%s751_s1 + $0x68] sm:$0xff]  ;;  %v46_v19 = vld [vmem:[%s751_s1 + $0x78] sm:$0xff]  ;;  %v387_v20 = vpack.c.bf16 %v41_v17, %v39_v16  ;;  %v43_v22 = vld [vmem:[%s751_s1 + $0x60] sm:$0xff] }
   0x6   :  { %382 = vmatprep.subr.bf16.mxu0 %v381_v9  ;;  %402 = vmatprep.subr.bf16.mxu1 %v381_v9  ;;  %v389_v21 = vpack.c.bf16 %v46_v19, %v44_v18  ;;  %v45_v23 = vld [vmem:[%s751_s1 + $0x70] sm:$0xff]  ;;  %v48_v24 = vld [vmem:[%s751_s1 + $0x88] sm:$0xff]  ;;  %v50_v25 = vld [vmem:[%s751_s1 + $0x98] sm:$0xff] }
   0x7   :  { %v391_v26 = vpack.c.bf16 %v45_v23, %v43_v22  ;;  %v393_v27 = vpack.c.bf16 %v50_v25, %v48_v24  ;;  %v47_v28 = vld [vmem:[%s751_s1 + $0x80] sm:$0xff]  ;;  %v49_v29 = vld [vmem:[%s751_s1 + $0x90] sm:$0xff]  ;;  %v52_v30 = vld [vmem:[%s751_s1 + $0xa8] sm:$0xff] }
   0x8   :  { %v54_v31 = vld [vmem:[%s751_s1 + $0xb8] sm:$0xff]  ;;  %v395_v32 = vpack.c.bf16 %v49_v29, %v47_v28  ;;  %v51_v34 = vld [vmem:[%s751_s1 + $0xa0] sm:$0xff]  ;;  %v53_v35 = vld [vmem:[%s751_s1 + $0xb0] sm:$0xff] }
   0x9   :  { %384 = vmatpush1.bf16.msra.mxu0 %v383_v14  ;;  %408 = vmatpush1.bf16.msra.mxu1 %v383_v14  ;;  %v397_v33 = vpack.c.bf16 %v54_v31, %v52_v30  ;;  %v399_v36 = vpack.c.bf16 %v53_v35, %v51_v34  ;;  %v14_v37 = vld [vmem:[%s752_s0] sm:$0xff]  ;;  %v23_v38 = vld [vmem:[%s752_s0 + $0x48] sm:$0xff]  ;;  %v24_v40 = vld [vmem:[%s752_s0 + $0x50] sm:$0xff] }
   0xa   :  { %386 = vmatprep.subr.bf16.mxu0 %v385_v15  ;;  %403 = vmatprep.subr.bf16.mxu1 %v385_v15  ;;  %v15_v39 = vld [vmem:[%s752_s0 + $0x8] sm:$0xff]  ;;  %v16_v41 = vld [vmem:[%s752_s0 + $0x10] sm:$0xff]  ;;  %v25_v42 = vld [vmem:[%s752_s0 + $0x58] sm:$0xff] }
   0xb   :  { %v17_v43 = vld [vmem:[%s752_s0 + $0x18] sm:$0xff]  ;;  %v26_v44 = vld [vmem:[%s752_s0 + $0x60] sm:$0xff]  ;;  %v27_v46 = vld [vmem:[%s752_s0 + $0x68] sm:$0xff] }
   0xc   :  { %v18_v45 = vld [vmem:[%s752_s0 + $0x20] sm:$0xff]  ;;  %v19_v47 = vld [vmem:[%s752_s0 + $0x28] sm:$0xff]  ;;  %v28_v48 = vld [vmem:[%s752_s0 + $0x70] sm:$0xff] }
   0xd   :  { %388 = vmatpush1.bf16.msra.mxu0 %v387_v20  ;;  %409 = vmatpush1.bf16.msra.mxu1 %v387_v20  ;;  %v20_v49 = vld [vmem:[%s752_s0 + $0x30] sm:$0xff]  ;;  %v29_v50 = vld [vmem:[%s752_s0 + $0x78] sm:$0xff]  ;;  %v30_v52 = vld [vmem:[%s752_s0 + $0x80] sm:$0x3f] }
   0xe   :  { %390 = vmatprep.subr.bf16.mxu0 %v389_v21  ;;  %404 = vmatprep.subr.bf16.mxu1 %v389_v21  ;;  %v21_v51 = vld [vmem:[%s752_s0 + $0x38] sm:$0xff]  ;;  %v22_v53 = vld [vmem:[%s752_s0 + $0x40] sm:$0xff] }
   0xf   :  { %v55_v57 = vld [vmem:[%s753_s2] sm:$0x3] }
  0x10   :  { %v595_v59 = vrot.slane %v55_v57, %v59_v56  ;;  %v597_v60 = vrot.slane %v55_v57, %v63_v58 }
  0x11   :  { %392 = vmatpush1.bf16.msra.mxu0 %v391_v26  ;;  %410 = vmatpush1.bf16.msra.mxu1 %v391_v26 }
  0x12   :  { %394 = vmatprep.subr.bf16.mxu0 %v393_v27  ;;  %405 = vmatprep.subr.bf16.mxu1 %v393_v27 }
  0x15   :  { %396 = vmatpush1.bf16.msra.mxu0 %v395_v32  ;;  %411 = vmatpush1.bf16.msra.mxu1 %v395_v32 }
  0x16   :  { %398 = vmatprep.subr.bf16.mxu0 %v397_v33  ;;  %406 = vmatprep.subr.bf16.mxu1 %v397_v33 }
  0x19   :  { %400 = vmatpush1.bf16.msra.mxu0 %v399_v36  ;;  %412 = vmatpush1.bf16.msra.mxu1 %v399_v36 }
  0x1c   :  { %360 = vmatmul.mubr.msk.f32.vlgmr.msra.gmra.mrb[0].mxu0 %vm67_vm0, %v14_v37  ;;  %369 = vmatmul.mubr.msk.f32.vlgmr.msra.gmra.mrb[0].mxu1 %vm67_vm0, %v23_v38 }
  0x1d   :  { %189 = vmatprep.mubr.f32.mxu0 %v414_v3  ;;  %243 = vmatprep.mubr.f32.mxu1 %v414_v3 }
  0x20   :  { %361 = vmatmul.mubr.msk.f32.gmra.mrb[2].mxu0 %vm67_vm0, %v15_v39  ;;  %370 = vmatmul.mubr.msk.f32.gmra.mrb[2].mxu1 %vm67_vm0, %v24_v40 }
  0x21   :  { %195 = vmatprep.mubr.f32.mxu0 %v414_v3  ;;  %249 = vmatprep.mubr.f32.mxu1 %v414_v3 }
  0x24   :  { %362 = vmatmul.mubr.msk.f32.gmra.mrb[4].mxu0 %vm67_vm0, %v16_v41  ;;  %371 = vmatmul.mubr.msk.f32.gmra.mrb[4].mxu1 %vm67_vm0, %v25_v42 }
  0x25   :  { %201 = vmatprep.mubr.f32.mxu0 %v414_v3  ;;  %255 = vmatprep.mubr.f32.mxu1 %v414_v3 }
  0x28   :  { %363 = vmatmul.mubr.msk.f32.gmra.mrb[6].mxu0 %vm67_vm0, %v17_v43  ;;  %372 = vmatmul.mubr.msk.f32.gmra.mrb[6].mxu1 %vm67_vm0, %v26_v44 }
  0x29   :  { %207 = vmatprep.mubr.f32.mxu0 %v414_v3  ;;  %261 = vmatprep.mubr.f32.mxu1 %v414_v3 }
  0x2c   :  { %364 = vmatmul.mubr.msk.f32.gmra.mrb[8].mxu0 %vm67_vm0, %v18_v45  ;;  %373 = vmatmul.mubr.msk.f32.gmra.mrb[8].mxu1 %vm67_vm0, %v27_v46 }
  0x2d   :  { %213 = vmatprep.mubr.f32.mxu0 %v414_v3  ;;  %267 = vmatprep.mubr.f32.mxu1 %v414_v3 }
  0x30   :  { %365 = vmatmul.mubr.msk.f32.gmra.mrb[10].mxu0 %vm67_vm0, %v19_v47  ;;  %374 = vmatmul.mubr.msk.f32.gmra.mrb[10].mxu1 %vm67_vm0, %v28_v48 }
  0x31   :  { %219 = vmatprep.mubr.f32.mxu0 %v414_v3  ;;  %273 = vmatprep.mubr.f32.mxu1 %v414_v3 }
  0x34   :  { %366 = vmatmul.mubr.msk.f32.gmra.mrb[12].mxu0 %vm67_vm0, %v20_v49  ;;  %375 = vmatmul.mubr.msk.f32.gmra.mrb[12].mxu1 %vm67_vm0, %v29_v50 }
  0x35   :  { %225 = vmatprep.mubr.f32.mxu0 %v414_v3  ;;  %279 = vmatprep.mubr.f32.mxu1 %v414_v3 }
  0x38   :  { %367 = vmatmul.mubr.msk.f32.gmra.mrb[14].mxu0 %vm67_vm0, %v21_v51  ;;  %376 = vmatmul.mubr.msk.f32.gmra.mrb[14].mxu1 %vm67_vm0, %v30_v52 }
  0x39   :  { %231 = vmatprep.mubr.f32.mxu0 %v414_v3 }
  0x3c   :  { %368 = vmatmul.mubr.msk.f32.gmra.mrb[16].mxu0 %vm67_vm0, %v22_v53 }
  0xef   :  { %v185_v61 = vpop.f32.mrb[0].mxu0  ;;  %v239_v62 = vpop.f32.mrb[0].mxu1 }
  0xf0   :  { %v186_v63 = vadd.f32 %v185_v61, %v595_v59  ;;  %v187_v0 = vpop.f32.mrb[1].mxu0  ;;  %v240_v1 = vadd.f32 %v239_v62, %v595_v59  ;;  %v241_v2 = vpop.f32.mrb[1].mxu1 }
  0xf1   :  { %v188_v3 = vadd.f32 %v187_v0, %v597_v60  ;;  %v242_v4 = vadd.f32 %v241_v2, %v597_v60 }
  0xf2   :  { %v286_v5 = vmax.f32 %v186_v63, 0.0  ;;  %v304_v6 = vmax.f32 %v240_v1, 0.0 }
  0xf3   :  { %v287_v7 = vmax.f32 %v188_v3, 0.0  ;;  %v191_v8 = vpop.f32.mrb[2].mxu0  ;;  %v305_v9 = vmax.f32 %v242_v4, 0.0  ;;  %v245_v10 = vpop.f32.mrb[2].mxu1 }
  0xf4   :  { %320 = vst [vmem:[%s754_s3] sm:$0xff] %v286_v5  ;;  %339 = vst [vmem:[%s754_s3 + $0x90] sm:$0xff] %v304_v6  ;;  %v192_v11 = vadd.f32 %v191_v8, %v595_v59  ;;  %v193_v12 = vpop.f32.mrb[3].mxu0  ;;  %v246_v13 = vadd.f32 %v245_v10, %v595_v59  ;;  %v247_v14 = vpop.f32.mrb[3].mxu1 }
  0xf5   :  { %322 = vst.msk [vmem:[%s754_s3 + $0x8] sm:$0xff] %vm321_vm1, %v287_v7  ;;  %340 = vst.msk [vmem:[%s754_s3 + $0x98] sm:$0xff] %vm321_vm1, %v305_v9  ;;  %v194_v15 = vadd.f32 %v193_v12, %v597_v60  ;;  %v248_v16 = vadd.f32 %v247_v14, %v597_v60 }
  0xf6   :  { %v288_v17 = vmax.f32 %v192_v11, 0.0  ;;  %v306_v18 = vmax.f32 %v246_v13, 0.0 }
  0xf7   :  { %v289_v19 = vmax.f32 %v194_v15, 0.0  ;;  %v197_v20 = vpop.f32.mrb[4].mxu0  ;;  %v307_v21 = vmax.f32 %v248_v16, 0.0  ;;  %v251_v22 = vpop.f32.mrb[4].mxu1 }
  0xf8   :  { %323 = vst [vmem:[%s754_s3 + $0x10] sm:$0xff] %v288_v17  ;;  %341 = vst [vmem:[%s754_s3 + $0xa0] sm:$0xff] %v306_v18  ;;  %v198_v23 = vadd.f32 %v197_v20, %v595_v59  ;;  %v199_v24 = vpop.f32.mrb[5].mxu0  ;;  %v252_v25 = vadd.f32 %v251_v22, %v595_v59  ;;  %v253_v26 = vpop.f32.mrb[5].mxu1 }
  0xf9   :  { %324 = vst.msk [vmem:[%s754_s3 + $0x18] sm:$0xff] %vm321_vm1, %v289_v19  ;;  %342 = vst.msk [vmem:[%s754_s3 + $0xa8] sm:$0xff] %vm321_vm1, %v307_v21  ;;  %v200_v27 = vadd.f32 %v199_v24, %v597_v60  ;;  %v254_v28 = vadd.f32 %v253_v26, %v597_v60 }
  0xfa   :  { %v290_v29 = vmax.f32 %v198_v23, 0.0  ;;  %v308_v30 = vmax.f32 %v252_v25, 0.0 }
  0xfb   :  { %v291_v31 = vmax.f32 %v200_v27, 0.0  ;;  %v203_v32 = vpop.f32.mrb[6].mxu0  ;;  %v309_v33 = vmax.f32 %v254_v28, 0.0  ;;  %v257_v34 = vpop.f32.mrb[6].mxu1 }
  0xfc   :  { %325 = vst [vmem:[%s754_s3 + $0x20] sm:$0xff] %v290_v29  ;;  %343 = vst [vmem:[%s754_s3 + $0xb0] sm:$0xff] %v308_v30  ;;  %v204_v35 = vadd.f32 %v203_v32, %v595_v59  ;;  %v205_v36 = vpop.f32.mrb[7].mxu0  ;;  %v258_v37 = vadd.f32 %v257_v34, %v595_v59  ;;  %v259_v38 = vpop.f32.mrb[7].mxu1 }
  0xfd   :  { %326 = vst.msk [vmem:[%s754_s3 + $0x28] sm:$0xff] %vm321_vm1, %v291_v31  ;;  %344 = vst.msk [vmem:[%s754_s3 + $0xb8] sm:$0xff] %vm321_vm1, %v309_v33  ;;  %v206_v39 = vadd.f32 %v205_v36, %v597_v60  ;;  %v260_v40 = vadd.f32 %v259_v38, %v597_v60 }
  0xfe   :  { %v292_v41 = vmax.f32 %v204_v35, 0.0  ;;  %v310_v42 = vmax.f32 %v258_v37, 0.0 }
  0xff   :  { %v293_v43 = vmax.f32 %v206_v39, 0.0  ;;  %v209_v44 = vpop.f32.mrb[8].mxu0  ;;  %v311_v45 = vmax.f32 %v260_v40, 0.0  ;;  %v263_v46 = vpop.f32.mrb[8].mxu1 }
 0x100   :  { %327 = vst [vmem:[%s754_s3 + $0x30] sm:$0xff] %v292_v41  ;;  %345 = vst [vmem:[%s754_s3 + $0xc0] sm:$0xff] %v310_v42  ;;  %v210_v47 = vadd.f32 %v209_v44, %v595_v59  ;;  %v211_v48 = vpop.f32.mrb[9].mxu0  ;;  %v264_v49 = vadd.f32 %v263_v46, %v595_v59  ;;  %v265_v50 = vpop.f32.mrb[9].mxu1 }
 0x101   :  { %328 = vst.msk [vmem:[%s754_s3 + $0x38] sm:$0xff] %vm321_vm1, %v293_v43  ;;  %346 = vst.msk [vmem:[%s754_s3 + $0xc8] sm:$0xff] %vm321_vm1, %v311_v45  ;;  %v212_v51 = vadd.f32 %v211_v48, %v597_v60  ;;  %v266_v52 = vadd.f32 %v265_v50, %v597_v60 }
 0x102   :  { %v294_v53 = vmax.f32 %v210_v47, 0.0  ;;  %v312_v54 = vmax.f32 %v264_v49, 0.0 }
 0x103   :  { %v295_v55 = vmax.f32 %v212_v51, 0.0  ;;  %v215_v56 = vpop.f32.mrb[10].mxu0  ;;  %v313_v57 = vmax.f32 %v266_v52, 0.0  ;;  %v269_v58 = vpop.f32.mrb[10].mxu1 }
 0x104   :  { %329 = vst [vmem:[%s754_s3 + $0x40] sm:$0xff] %v294_v53  ;;  %347 = vst [vmem:[%s754_s3 + $0xd0] sm:$0xff] %v312_v54  ;;  %v216_v61 = vadd.f32 %v215_v56, %v595_v59  ;;  %v217_v62 = vpop.f32.mrb[11].mxu0  ;;  %v270_v63 = vadd.f32 %v269_v58, %v595_v59  ;;  %v271_v0 = vpop.f32.mrb[11].mxu1 }
 0x105   :  { %330 = vst.msk [vmem:[%s754_s3 + $0x48] sm:$0xff] %vm321_vm1, %v295_v55  ;;  %348 = vst.msk [vmem:[%s754_s3 + $0xd8] sm:$0xff] %vm321_vm1, %v313_v57  ;;  %v218_v1 = vadd.f32 %v217_v62, %v597_v60  ;;  %v272_v2 = vadd.f32 %v271_v0, %v597_v60 }
 0x106   :  { %v296_v3 = vmax.f32 %v216_v61, 0.0  ;;  %v314_v4 = vmax.f32 %v270_v63, 0.0 }
 0x107   :  { %v297_v5 = vmax.f32 %v218_v1, 0.0  ;;  %v221_v6 = vpop.f32.mrb[12].mxu0  ;;  %v315_v7 = vmax.f32 %v272_v2, 0.0  ;;  %v275_v8 = vpop.f32.mrb[12].mxu1 }
 0x108   :  { %331 = vst [vmem:[%s754_s3 + $0x50] sm:$0xff] %v296_v3  ;;  %349 = vst [vmem:[%s754_s3 + $0xe0] sm:$0xff] %v314_v4  ;;  %v222_v9 = vadd.f32 %v221_v6, %v595_v59  ;;  %v223_v10 = vpop.f32.mrb[13].mxu0  ;;  %v276_v11 = vadd.f32 %v275_v8, %v595_v59  ;;  %v277_v12 = vpop.f32.mrb[13].mxu1 }
 0x109   :  { %332 = vst.msk [vmem:[%s754_s3 + $0x58] sm:$0xff] %vm321_vm1, %v297_v5  ;;  %350 = vst.msk [vmem:[%s754_s3 + $0xe8] sm:$0xff] %vm321_vm1, %v315_v7  ;;  %v224_v13 = vadd.f32 %v223_v10, %v597_v60  ;;  %v278_v14 = vadd.f32 %v277_v12, %v597_v60 }
 0x10a   :  { %v298_v15 = vmax.f32 %v222_v9, 0.0  ;;  %v316_v16 = vmax.f32 %v276_v11, 0.0 }
 0x10b   :  { %v299_v17 = vmax.f32 %v224_v13, 0.0  ;;  %v227_v18 = vpop.f32.mrb[14].mxu0  ;;  %v317_v19 = vmax.f32 %v278_v14, 0.0  ;;  %v281_v20 = vpop.f32.mrb[14].mxu1 }
 0x10c   :  { %333 = vst [vmem:[%s754_s3 + $0x60] sm:$0xff] %v298_v15  ;;  %351 = vst [vmem:[%s754_s3 + $0xf0] sm:$0xff] %v316_v16  ;;  %v228_v21 = vadd.f32 %v227_v18, %v595_v59  ;;  %v229_v22 = vpop.f32.mrb[15].mxu0  ;;  %v282_v23 = vadd.f32 %v281_v20, %v595_v59  ;;  %v283_v24 = vpop.f32.mrb[15].mxu1 }
 0x10d   :  { %334 = vst.msk [vmem:[%s754_s3 + $0x68] sm:$0xff] %vm321_vm1, %v299_v17  ;;  %352 = vst.msk [vmem:[%s754_s3 + $0xf8] sm:$0xff] %vm321_vm1, %v317_v19  ;;  %v230_v25 = vadd.f32 %v229_v22, %v597_v60  ;;  %v284_v26 = vadd.f32 %v283_v24, %v597_v60 }
 0x10e   :  { %v300_v27 = vmax.f32 %v228_v21, 0.0  ;;  %v318_v28 = vmax.f32 %v282_v23, 0.0 }
 0x10f   :  { %v301_v29 = vmax.f32 %v230_v25, 0.0  ;;  %v233_v30 = vpop.f32.mrb[16].mxu0  ;;  %v319_v31 = vmax.f32 %v284_v26, 0.0 }
 0x110   :  { %335 = vst [vmem:[%s754_s3 + $0x70] sm:$0xff] %v300_v27  ;;  %353 = vst [vmem:[%s754_s3 + $0x100] sm:$0x3f] %v318_v28  ;;  %v234_v32 = vadd.f32 %v233_v30, %v595_v59  ;;  %v235_v33 = vpop.f32.mrb[17].mxu0 }
 0x111   :  { %336 = vst.msk [vmem:[%s754_s3 + $0x78] sm:$0xff] %vm321_vm1, %v301_v29  ;;  %v236_v34 = vadd.f32 %v235_v33, %v597_v60 }
 0x112   :  { %355 = vst.msk [vmem:[%s754_s3 + $0x108] sm:$0x3f] %vm354_vm2, %v319_v31  ;;  %v302_v35 = vmax.f32 %v234_v32, 0.0 }
 0x113   :  { %v303_v36 = vmax.f32 %v236_v34, 0.0 }
 0x114   :  { %337 = vst [vmem:[%s754_s3 + $0x80] sm:$0xff] %v302_v35 }
 0x115   :  { %338 = vst.msk [vmem:[%s754_s3 + $0x88] sm:$0xff] %vm321_vm1, %v303_v36 }

</bundles_post_ra>
